<compile_context>
chip_gen: v5e
topology: v5e:2x2
jax: 0.10.0
libtpu: 0.0.40
codegen_flags: <defaults>
</compile_context>

<pallas_src>
import math
import functools

import jax
import jax.numpy as jnp
from jax.experimental import pallas as pl
from jax.experimental.pallas import tpu as pltpu


def _sdpa_kernel(mask_ref, q_ref, k_ref, v_ref, out_ref, *maybe_attn_ref, scale):
    attn_ref = maybe_attn_ref[0] if maybe_attn_ref else None

    # Blocks: q/k/v (T, S, D); mask (T, 1, S); out (T, S, D); attn (T, S, S)
    # Fold 1/sqrt(hidden_units) into Q (stays in input dtype -> bf16 MXU path if bf16).
    q = q_ref[...] * scale
    k = k_ref[...]
    v = v_ref[...]
    m = mask_ref[...]                       # (T, 1, S) broadcasts over query rows

    # attn_score = Q @ K^T : contract the last dim of BOTH operands (no transpose),
    # batch over the packed (b, h) axis.  fp32 accumulation on the MXU.
    scores = jax.lax.dot_general(
        q, k,
        dimension_numbers=(((2,), (2,)), ((0,), (0,))),
        preferred_element_type=jnp.float32)             # (T, S, S)

    # masked_fill(mask == 0, -1e9)
    scores = jnp.where(m == 0, jnp.float32(-1.0e9), scores)

    # Numerically-stable softmax; divide goes to the EUP (approx vrcp).
    scores = scores - jnp.max(scores, axis=-1, keepdims=True)
    e = jnp.exp(scores)
    attn = e * pl.reciprocal(jnp.sum(e, axis=-1, keepdims=True), approx=True)

    # TODO(synk): nn.Dropout is identity in eval mode; training-mode dropout
    # (pltpu.prng_seed + stateful bernoulli mask) is intentionally not applied.
    if attn_ref is not None:
        attn_ref[...] = attn.astype(attn_ref.dtype)

    # output = attn @ V  (contract attn's key axis with V's seq axis, batched on T).
    out = jax.lax.dot_general(
        attn.astype(v.dtype), v,
        dimension_numbers=(((2,), (1,)), ((0,), (0,))),
        preferred_element_type=jnp.float32)             # (T, S, D)
    out_ref[...] = out.astype(out_ref.dtype)


def _choose_bh_tile(bh, max_tile=8):
    """Largest divisor of bh (<= max_tile) that still leaves >= 2 grid steps."""
    best = 1
    for d in range(1, min(bh, max_tile) + 1):
        if bh % d == 0 and bh // d >= 2:
            best = d
    return best


def scaled_dot_product_attention(Q, K, V, mask, hidden_units, *,
                                 return_attn=True, bh_tile=None):
    """Matches the PyTorch module's forward.

    Returns (output [B,H,S,D], attn_dist [B,H,S,S]) when return_attn=True,
    otherwise just output (skips the large S x S HBM writeback).
    """
    B, H, S, D = Q.shape
    BH = B * H
    scale = 1.0 / math.sqrt(hidden_units)

    if bh_tile is None:
        bh_tile = _choose_bh_tile(BH)
    assert BH % bh_tile == 0, "bh_tile must divide B*H"

    # Flatten (B, H) into one leading axis (contiguous reshape, no data movement).
    q = Q.reshape(BH, S, D)
    k = K.reshape(BH, S, D)
    v = V.reshape(BH, S, D)
    # mask [B,1,1,S] -> replicate over heads -> [B*H, 1, S] so the kernel's
    # indexing is uniform along the flattened axis.
    m = jnp.broadcast_to(mask.reshape(B, 1, 1, S), (B, H, 1, S)).reshape(BH, 1, S)

    grid = (BH // bh_tile,)
    qkv_spec = pl.BlockSpec((bh_tile, S, D), lambda i: (i, 0, 0))
    mask_spec = pl.BlockSpec((bh_tile, 1, S), lambda i: (i, 0, 0))
    out_spec = pl.BlockSpec((bh_tile, S, D), lambda i: (i, 0, 0))

    out_shapes = [jax.ShapeDtypeStruct((BH, S, D), Q.dtype)]
    out_specs = [out_spec]
    if return_attn:
        out_shapes.append(jax.ShapeDtypeStruct((BH, S, S), Q.dtype))
        out_specs.append(pl.BlockSpec((bh_tile, S, S), lambda i: (i, 0, 0)))

    kernel = functools.partial(_sdpa_kernel, scale=scale)
    results = pl.pallas_call(
        kernel,
        out_shape=tuple(out_shapes),
        grid=grid,
        in_specs=[mask_spec, qkv_spec, qkv_spec, qkv_spec],
        out_specs=tuple(out_specs),
        compiler_params=pltpu.CompilerParams(
            dimension_semantics=("parallel",)),
    )(m, q, k, v)

    out = results[0].reshape(B, H, S, D)
    if return_attn:
        attn = results[1].reshape(B, H, S, S)
        return out, attn
    return out


def _reference(Q, K, V, mask, hidden_units):
    scores = jnp.einsum("bhqd,bhkd->bhqk", Q, K) / math.sqrt(hidden_units)
    scores = jnp.where(mask == 0, -1.0e9, scores)
    attn = jax.nn.softmax(scores, axis=-1)
    out = jnp.einsum("bhqk,bhkd->bhqd", attn, V)
    return out, attn


if __name__ == "__main__":
    B, H, S, D = 2, 2, 8, 32   # batch, num_heads, seq_len, hidden_units (per head)

    key = jax.random.PRNGKey(0)
    kq, kk, kv, km = jax.random.split(key, 4)
    Q = jax.random.normal(kq, (B, H, S, D), dtype=jnp.float32)
    K = jax.random.normal(kk, (B, H, S, D), dtype=jnp.float32)
    V = jax.random.normal(kv, (B, H, S, D), dtype=jnp.float32)
    # mask: [B, 1, 1, S] of 0/1 floats (0 => masked out)
    mask = (jax.random.uniform(km, (B, 1, 1, S)) > 0.3).astype(jnp.float32)
    # ensure at least one valid position per row
    mask = mask.at[:, :, :, 0].set(1.0)

    out, attn = scaled_dot_product_attention(Q, K, V, mask, hidden_units=D)
    jax.block_until_ready((out, attn))

    ref_out, ref_attn = _reference(Q, K, V, mask, hidden_units=D)
    # Tolerance loosened slightly vs 1e-5 because the softmax denominator uses the
    # EUP approx reciprocal (relative error ~1e-4).
    assert jnp.allclose(out, ref_out, atol=2e-3, rtol=2e-3), "output mismatch"
    assert jnp.allclose(attn, ref_attn, atol=2e-3, rtol=2e-3), "attn mismatch"

    # Exercise the fast path that skips the (B,H,S,S) attention writeback.
    out_only = scaled_dot_product_attention(Q, K, V, mask, hidden_units=D,
                                            return_attn=False)
    jax.block_until_ready(out_only)
    assert jnp.allclose(out_only, ref_out, atol=2e-3, rtol=2e-3), "fast-path mismatch"

    print("KERNEL_OK")
</pallas_src>

<mosaic_0001>
module attributes {stable_mosaic.version = 11 : i64} {
  func.func @_sdpa_kernel(%arg0: i32, %arg1: memref<2x1x8xf32, #tpu.memory_space<vmem>>, %arg2: memref<2x8x32xf32, #tpu.memory_space<vmem>>, %arg3: memref<2x8x32xf32, #tpu.memory_space<vmem>>, %arg4: memref<2x8x32xf32, #tpu.memory_space<vmem>>, %arg5: memref<2x8x32xf32, #tpu.memory_space<vmem>>, %arg6: memref<2x8x8xf32, #tpu.memory_space<vmem>>) attributes {dimension_semantics = [#tpu.dimension_semantics<parallel>], iteration_bounds = array<i64: 2>, scalar_prefetch = 0 : i64, scratch_operands = 0 : i64, tpu.core_type = #tpu.core_type<tc>, window_params = [{transform_indices = @transform_0, window_bounds = array<i64: 2, 1, 8>}, {transform_indices = @transform_1, window_bounds = array<i64: 2, 8, 32>}, {transform_indices = @transform_2, window_bounds = array<i64: 2, 8, 32>}, {transform_indices = @transform_3, window_bounds = array<i64: 2, 8, 32>}, {transform_indices = @transform_4, window_bounds = array<i64: 2, 8, 32>}, {transform_indices = @transform_5, window_bounds = array<i64: 2, 8, 8>}]} {
    %c0 = arith.constant 0 : index
    %c0_0 = arith.constant 0 : index
    %c0_1 = arith.constant 0 : index
    %0 = vector.load %arg2[%c0, %c0_0, %c0_1] : memref<2x8x32xf32, #tpu.memory_space<vmem>>, vector<2x8x32xf32>
    %cst = arith.constant 0.176776692 : f32
    %1 = vector.broadcast %cst : f32 to vector<2x8x32xf32>
    %2 = arith.mulf %0, %1 : vector<2x8x32xf32>
    %c0_2 = arith.constant 0 : index
    %c0_3 = arith.constant 0 : index
    %c0_4 = arith.constant 0 : index
    %3 = vector.load %arg3[%c0_2, %c0_3, %c0_4] : memref<2x8x32xf32, #tpu.memory_space<vmem>>, vector<2x8x32xf32>
    %c0_5 = arith.constant 0 : index
    %c0_6 = arith.constant 0 : index
    %c0_7 = arith.constant 0 : index
    %4 = vector.load %arg4[%c0_5, %c0_6, %c0_7] : memref<2x8x32xf32, #tpu.memory_space<vmem>>, vector<2x8x32xf32>
    %c0_8 = arith.constant 0 : index
    %c0_9 = arith.constant 0 : index
    %c0_10 = arith.constant 0 : index
    %5 = vector.load %arg1[%c0_8, %c0_9, %c0_10] : memref<2x1x8xf32, #tpu.memory_space<vmem>>, vector<2x1x8xf32>
    %cst_11 = arith.constant dense<0.000000e+00> : vector<2x8x8xf32>
    %6 = tpu.matmul %2, %3, %cst_11 {dimension_numbers = #tpu.dot_dimension_numbers<[2], [2], [1], [1], [0, 0, 0, 1, 1, 1], [0], [0]>} : vector<2x8x32xf32>, vector<2x8x32xf32>, vector<2x8x8xf32> -> vector<2x8x8xf32>
    %cst_12 = arith.constant 0.000000e+00 : f32
    %7 = vector.broadcast %cst_12 : f32 to vector<2x1x8xf32>
    %8 = arith.cmpf oeq, %5, %7 : vector<2x1x8xf32>
    %cst_13 = arith.constant -1.000000e+09 : f32
    %9 = vector.shape_cast %8 : vector<2x1x8xi1> to vector<2x1x8xi1>
    %10 = vector.broadcast %9 : vector<2x1x8xi1> to vector<2x8x8xi1>
    %11 = vector.broadcast %cst_13 : f32 to vector<2x8x8xf32>
    %12 = arith.select %10, %11, %6 : vector<2x8x8xi1>, vector<2x8x8xf32>
    %cst_14 = arith.constant dense<0xFF800000> : vector<2x8xf32>
    %13 = vector.multi_reduction <maximumf>, %12, %cst_14 [2] : vector<2x8x8xf32> to vector<2x8xf32>
    %14 = vector.shape_cast %13 : vector<2x8xf32> to vector<2x8x1xf32>
    %15 = vector.broadcast %14 : vector<2x8x1xf32> to vector<2x8x8xf32>
    %16 = arith.subf %12, %15 : vector<2x8x8xf32>
    %17 = math.exp %16 : vector<2x8x8xf32>
    %cst_15 = arith.constant dense<0.000000e+00> : vector<2x8xf32>
    %18 = vector.multi_reduction <add>, %17, %cst_15 [2] : vector<2x8x8xf32> to vector<2x8xf32>
    %19 = vector.shape_cast %18 : vector<2x8xf32> to vector<2x8x1xf32>
    %20 = tpu.reciprocal %19 {approx = true} : vector<2x8x1xf32> -> vector<2x8x1xf32>
    %21 = vector.broadcast %20 : vector<2x8x1xf32> to vector<2x8x8xf32>
    %22 = arith.mulf %17, %21 : vector<2x8x8xf32>
    %c0_16 = arith.constant 0 : index
    %c0_17 = arith.constant 0 : index
    %c0_18 = arith.constant 0 : index
    %23 = vector.load %arg6[%c0_16, %c0_17, %c0_18] : memref<2x8x8xf32, #tpu.memory_space<vmem>>, vector<2x8x8xf32>
    tpu.vector_store %arg6[%c0_16, %c0_17, %c0_18], %22 {strides = array<i32>} : memref<2x8x8xf32, #tpu.memory_space<vmem>>, vector<2x8x8xf32>,
    %cst_19 = arith.constant dense<0.000000e+00> : vector<2x8x32xf32>
    %24 = tpu.matmul %22, %4, %cst_19 {dimension_numbers = #tpu.dot_dimension_numbers<[2], [1], [1], [2], [0, 0, 0, 1, 1, 2], [0], [0]>} : vector<2x8x8xf32>, vector<2x8x32xf32>, vector<2x8x32xf32> -> vector<2x8x32xf32>
    %c0_20 = arith.constant 0 : index
    %c0_21 = arith.constant 0 : index
    %c0_22 = arith.constant 0 : index
    %25 = vector.load %arg5[%c0_20, %c0_21, %c0_22] : memref<2x8x32xf32, #tpu.memory_space<vmem>>, vector<2x8x32xf32>
    tpu.vector_store %arg5[%c0_20, %c0_21, %c0_22], %24 {strides = array<i32>} : memref<2x8x32xf32, #tpu.memory_space<vmem>>, vector<2x8x32xf32>,
    return
  }
  func.func @transform_0(%arg0: i32) -> (i32, i32, i32) {
    %c0_i32 = arith.constant 0 : i32
    %c0_i32_0 = arith.constant 0 : i32
    %c0_i32_1 = arith.constant 0 : i32
    return %arg0, %c0_i32, %c0_i32_0 : i32, i32, i32
  }
  func.func @transform_1(%arg0: i32) -> (i32, i32, i32) {
    %c0_i32 = arith.constant 0 : i32
    %c0_i32_0 = arith.constant 0 : i32
    %c0_i32_1 = arith.constant 0 : i32
    return %arg0, %c0_i32, %c0_i32_0 : i32, i32, i32
  }
  func.func @transform_2(%arg0: i32) -> (i32, i32, i32) {
    %c0_i32 = arith.constant 0 : i32
    %c0_i32_0 = arith.constant 0 : i32
    %c0_i32_1 = arith.constant 0 : i32
    return %arg0, %c0_i32, %c0_i32_0 : i32, i32, i32
  }
  func.func @transform_3(%arg0: i32) -> (i32, i32, i32) {
    %c0_i32 = arith.constant 0 : i32
    %c0_i32_0 = arith.constant 0 : i32
    %c0_i32_1 = arith.constant 0 : i32
    return %arg0, %c0_i32, %c0_i32_0 : i32, i32, i32
  }
  func.func @transform_4(%arg0: i32) -> (i32, i32, i32) {
    %c0_i32 = arith.constant 0 : i32
    %c0_i32_0 = arith.constant 0 : i32
    %c0_i32_1 = arith.constant 0 : i32
    return %arg0, %c0_i32, %c0_i32_0 : i32, i32, i32
  }
  func.func @transform_5(%arg0: i32) -> (i32, i32, i32) {
    %c0_i32 = arith.constant 0 : i32
    %c0_i32_0 = arith.constant 0 : i32
    %c0_i32_1 = arith.constant 0 : i32
    return %arg0, %c0_i32, %c0_i32_0 : i32, i32, i32
  }
}

</mosaic_0001>

<bundles_post_ra>
// kernel: tpu_custom_call.1
= control target key start
LH: loop header
LB: loop body
LE: loop exit
PB: predicated region body
PF: predicated region fallthrough
CT: control target
= control target key end

     0   :  { %s1383_s0 = inlined_call_operand.hbm [shape: f32[4,1,8], index: 0, kind: input, shape index: {}]   ;;  %s1384_s1 = inlined_call_operand.hbm [shape: f32[4,8,32], index: 1, kind: input, shape index: {}]   ;;  %s1385_s2 = inlined_call_operand.hbm [shape: f32[4,8,32], index: 2, kind: input, shape index: {}]   ;;  %s1386_s3 = inlined_call_operand.hbm [shape: f32[4,8,32], index: 3, kind: input, shape index: {}]   ;;  %s1387_s4 = inlined_call_operand.hbm [shape: f32[4,8,32], index: 4, kind: output, shape index: {0}]   ;;  %s1388_s5 = inlined_call_operand.hbm [shape: f32[4,8,8], index: 5, kind: output, shape index: {1}]  }
   0x1   :  { %1398 = sst [smem:[#allocation23_spill]] %s1384_s1 }
   0x2   :  { %11 = vsyncpa [#allocation3], 0 }
   0x3   :  { %13 = vsyncpa [#allocation3 + $0x1], 0 }
   0x4   :  { %14 = vsyncpa [#allocation6], 0 }
   0x5   :  { %16 = vsyncpa [#allocation6 + $0x1], 0 }
   0x6   :  { %17 = vsyncpa [#allocation9], 0 }
   0x7   :  { %19 = vsyncpa [#allocation9 + $0x1], 0 }
   0x8   :  { %20 = vsyncpa [#allocation4], 0 }
   0x9   :  { %22 = vsyncpa [#allocation4 + $0x1], 0 }
   0xa   :  { %23 = vsyncpa [#allocation12], 0 }
   0xb   :  { %25 = vsyncpa [#allocation12 + $0x1], 0  ;;  %s1126_s18 = smov 0   ;;  %s1128_s19 = smov 0  }
   0xc   :  { %s1130_s20 = smov 0   ;;  %s1132_s21 = smov 0  }
   0xd LB: > { %1399 = sst [smem:[#allocation18_spill]] %s1083_s20  ;;  %s1147_s22 = sadd.s32 4294967295, %s1087_s21   ;;  %s1087_s21 = sphi %s1132_s21, %s1414_s21   ;;  %s1083_s20 = sphi %s1130_s20, %s1416_s20   ;;  %s1079_s19 = sphi %s1128_s19, %s1418_s19   ;;  %s1075_s18 = sphi %s1126_s18, %s1417_s18  }
   0xe   : > { %1400 = sst [smem:[#allocation19_spill]] %s1087_s21  ;;  %s740_s23 = sadd.s32 4294967294, %s1087_s21  }
   0xf   : > { %s1151_s24 = sadd.s32 1, %s1087_s21   ;;  %s38_s25 = sadd.s32 1, %s1083_s20 }
  0x10   : > { %1401 = sst [smem:[#allocation20_spill]] %s1151_s24  ;;  %s35_s26 = ssub.s32 %s1087_s21, %s1151_s24 }
  0x11   : > { %p45_p0 = scmp.ne.s32.totalorder %s1083_s20, %s1079_s19  ;;  %p36_p1 = scmp.eq.s32.totalorder %s35_s26, 0 }
  0x12   : > { %p46_p2 = scmp.eq.s32.totalorder %s1087_s21, 0  ;;  %p51_p3 = scmp.ne.s32.totalorder %s1079_s19, %s1075_s18 }
  0x13   : > { %p52_p4 = scmp.eq.s32.totalorder %s1147_s22, 0  ;;  %p153_p7 = scmp.eq.s32.totalorder %s1147_s22, 1 }
  0x14   : > { %s1163_s27 = scalar_select %p36_p1, %s1083_s20, %s38_s25  }
  0x15   : > { %p47_p5 = por %p46_p2, %p45_p0  ;;  %p1165_p6 = por %p52_p4, %p51_p3 }
  0x16   : > { %1402 = sst [smem:[#allocation21_spill]] %s1163_s27  ;;  %p159_p8 = scmp.eq.s32.totalorder %s740_s23, 1 }
  0x17   : > { %p742_p9 = scmp.ge.s32.totalorder %s1087_s21, 2  ;;  %p812_p10 = scmp.lt.s32.totalorder %s1087_s21, 2 }
  0x18   : > { %p1172_p11 = por %p153_p7, %p45_p0  ;;  %p1176_p12 = por %p159_p8, %p51_p3 }
  0x19   : > { %s1181_s6 = sand.u32 1, %s1083_s20   ;;  %p1183_p13 = pnand %p812_p10, %p47_p5 }
  0x1a   : > { %s1405_s30 = scalar_select %p1176_p12, 1, 0 }
  0x1b   : > { %s226_s8 = sand.u32 1, %s1087_s21   ;;  %s1189_s9 = sshll.u32 %s1181_s6, 4 }
  0x1c   : > { %1406 = sst [smem:[#allocation22_spill]] %s1405_s30  ;;  %s1192_s10 = sshll.u32 %s1087_s21, 4 }
  0x1d   : > { %s1408_s1 = sld [smem:[#allocation23_spill]]  ;;  %s230_s14 = scalar_lea.vmem [#allocation5], %s1189_s9 }
  0x1e   : > { %s238_s15 = sshll.u32 %s230_s14, 4  ;;  %p754_p0 = scmp.ge.s32.totalorder %s1087_s21, 1  ;;  %s239_s15 = int_to_ptr.vmem [resolvable:$true] %s238_s15 }
  0x1f   : > { %s1200_s17 = scalar_lea.sflag [#allocation6], %s226_s8  ;;  %p865_p2 = pneg %p1183_p13 }
  0x23   : > { %s235_s13 = scalar_lea.hbm %s1408_s1, %s1192_s10  ;;  %s868_s12 = scalar_lea.hbm %s1408_s1, 32 }
  0x24   : > { %s236_s16 = sshll.u32 %s235_s13, 4  ;;  %s237_s16 = int_to_ptr.hbm [resolvable:$true] %s236_s16 }
  0x25   : > { %s861_s23 = sshra.s32 %s237_s16, 4  ;;  %s862_s23 = int_to_ptr.hbm [resolvable:$true] %s861_s23 }
  0x26   : > { %s863_s25 = scalar_lea.hbm %s862_s23, 16  ;;  %p869_p5 = scmp.lt.s32.totalorder %s862_s23, %s1408_s1 }
  0x27   : > { %p864_p1 = scmp.ne.s32.totalorder %s862_s23, %s863_s25  ;;  %p870_p7 = scmp.lt.s32.totalorder %s868_s12, %s863_s25 }
  0x29   : > { %p866_p3 = pnand %p865_p2, %p864_p1  ;;  %p871_p8 = por %p870_p7, %p869_p5 }
  0x2b   : > { %p867_p4 = pneg %p866_p3 }
  0x2d   : > { %p872_p10 = pnand %p871_p8, %p867_p4 }
  0x2f   : > { %875 = shalt.err (!%p872_p10)
}
  0x30   : > { %s1392_s8 = smov 128   ;;  %s1394_s27 = smov 8  }
  0x31   : > { %798 = dma.hbm_to_vmem [thread:$0]  (!%p1183_p13), %s237_s16, 256, %s239_s15, %s1200_s17, %s1392_s8, %s1392_s8, %s1394_s27  }
  0x32   : > { %p290_p1 = scmp.lt.s32.totalorder %s1087_s21, 3  ;;  %s743_s23 = sshll.u32 %s1181_s6, 1 }
  0x33   : > { %s744_s25 = sshll.u32 %s1087_s21, 1  ;;  %s209_s14 = scalar_lea.vmem [#allocation2], %s743_s23 }
  0x34   : > { %p1224_p3 = pnand %p754_p0, %p290_p1  ;;  %s213_s13 = scalar_lea.hbm %s1383_s0, %s744_s25 }
  0x35   : > { %s216_s1 = sshll.u32 %s209_s14, 4  ;;  %s214_s20 = sshll.u32 %s213_s13, 4  ;;  %s217_s1 = int_to_ptr.vmem [resolvable:$true] %s216_s1  ;;  %s215_s20 = int_to_ptr.hbm [resolvable:$true] %s214_s20 }
  0x36   : > { %s206_s24 = scalar_lea.sflag [#allocation3], %s1181_s6  ;;  %s891_s15 = sshra.s32 %s215_s20, 4  ;;  %s892_s15 = int_to_ptr.hbm [resolvable:$true] %s891_s15 }
  0x37   : > { %s893_s16 = scalar_lea.hbm %s892_s15, 2  ;;  %s898_s21 = scalar_lea.hbm %s1383_s0, 4 }
  0x38   : > { %p894_p4 = scmp.ne.s32.totalorder %s892_s15, %s893_s16  ;;  %p899_p7 = scmp.lt.s32.totalorder %s892_s15, %s1383_s0 }
  0x39   : > { %p900_p8 = scmp.lt.s32.totalorder %s898_s21, %s893_s16 }
  0x3a   : > { %p896_p0 = pnand %p894_p4, %p865_p2 }
  0x3b   : > { %p901_p10 = por %p900_p8, %p899_p7 }
  0x3c   : > { %p897_p5 = pneg %p896_p0 }
  0x3e   : > { %p902_p1 = pnand %p901_p10, %p897_p5 }
  0x40   : > { %905 = shalt.err (!%p902_p1)
}
  0x41   : > { %s1091_s23 = smov 16   ;;  %s1092_s12 = smov 1  }
  0x42   : > { %795 = dma.hbm_to_vmem [thread:$0]  (!%p1183_p13), %s215_s20, 32, %s217_s1, %s206_s24, %s1091_s23, %s1091_s23, %s1092_s12  }
  0x43   : > { %s257_s27 = scalar_lea.hbm %s1385_s2, %s1192_s10  ;;  %s252_s8 = scalar_lea.vmem [#allocation7], %s1189_s9 }
  0x44   : > { %s260_s30 = sshll.u32 %s252_s8, 4  ;;  %s258_s11 = sshll.u32 %s257_s27, 4  ;;  %s261_s30 = int_to_ptr.vmem [resolvable:$true] %s260_s30  ;;  %s259_s11 = int_to_ptr.hbm [resolvable:$true] %s258_s11 }
  0x45   : > { %s921_s21 = sshra.s32 %s259_s11, 4  ;;  %s928_s1 = scalar_lea.hbm %s1385_s2, 32  ;;  %s922_s21 = int_to_ptr.hbm [resolvable:$true] %s921_s21 }
  0x46   : > { %s923_s15 = scalar_lea.hbm %s922_s21, 16  ;;  %p929_p7 = scmp.lt.s32.totalorder %s922_s21, %s1385_s2 }
  0x47   : > { %p924_p4 = scmp.ne.s32.totalorder %s922_s21, %s923_s15  ;;  %p930_p8 = scmp.lt.s32.totalorder %s928_s1, %s923_s15 }
  0x49   : > { %p926_p0 = pnand %p924_p4, %p865_p2  ;;  %p931_p10 = por %p930_p8, %p929_p7 }
  0x4b   : > { %p927_p5 = pneg %p926_p0 }
  0x4d   : > { %p932_p1 = pnand %p931_p10, %p927_p5 }
  0x4f   : > { %935 = shalt.err (!%p932_p1)
}
  0x50   : > { %s1410_s23 = smov 8   ;;  %s1411_s12 = smov 128  }
  0x51   : > { %801 = dma.hbm_to_vmem [thread:$0]  (!%p1183_p13), %s259_s11, 256, %s261_s30, %s1200_s17, %s1411_s12, %s1411_s12, %s1410_s23  }
  0x52   : > { %s279_s27 = scalar_lea.hbm %s1386_s3, %s1192_s10  ;;  %s274_s21 = scalar_lea.vmem [#allocation8], %s1189_s9 }
  0x53   : > { %s280_s8 = sshll.u32 %s279_s27, 4  ;;  %s282_s15 = sshll.u32 %s274_s21, 4  ;;  %s281_s8 = int_to_ptr.hbm [resolvable:$true] %s280_s8  ;;  %s283_s15 = int_to_ptr.vmem [resolvable:$true] %s282_s15 }
  0x54   : > { %s271_s16 = scalar_lea.sflag [#allocation9], %s1181_s6  ;;  %s951_s25 = sshra.s32 %s281_s8, 4  ;;  %s952_s25 = int_to_ptr.hbm [resolvable:$true] %s951_s25 }
  0x55   : > { %s953_s1 = scalar_lea.hbm %s952_s25, 16  ;;  %s958_s17 = scalar_lea.hbm %s1386_s3, 32 }
  0x56   : > { %p954_p4 = scmp.ne.s32.totalorder %s952_s25, %s953_s1  ;;  %p959_p7 = scmp.lt.s32.totalorder %s952_s25, %s1386_s3 }
  0x57   : > { %p960_p8 = scmp.lt.s32.totalorder %s958_s17, %s953_s1 }
  0x58   : > { %p956_p0 = pnand %p954_p4, %p865_p2 }
  0x59   : > { %p961_p10 = por %p960_p8, %p959_p7 }
  0x5a   : > { %p957_p5 = pneg %p956_p0 }
  0x5c   : > { %p962_p1 = pnand %p961_p10, %p957_p5 }
  0x5e   : > { %965 = shalt.err (!%p962_p1)
}
  0x5f   : > { %804 = dma.hbm_to_vmem [thread:$0]  (!%p1183_p13), %s281_s8, 256, %s283_s15, %s271_s16, %s1411_s12, %s1411_s12, %s1410_s23  }
  0x60   : > { %294 = sbr.rel (%p1224_p3) target bundleno = 636 (0x27c), region = 36  ;;  %s1286_s6 = sand.u32 (!%p1224_p3), 1, %s1079_s19  }
  0x61   : > { %s755_s9 = sshll.u32 (!%p1224_p3), %s1286_s6, 1  ;;  %s297_s24 = scalar_lea.sflag (!%p1224_p3), [#allocation3], %s1286_s6 }
  0x62   : > { %s300_s13 = scalar_lea.vmem (!%p1224_p3), [#allocation2], %s755_s9 }
  0x65   : > { %1054 = dma.done.wait (%p1165_p6), %s297_s24, 32  }
  0x66   : > { %1056 = vsyncadd (%p1165_p6), %s297_s24, 4294967264  ;;  %s306_s7 = sand.u32 1, %s1147_s22   ;;  %s1296_s26 = sshll.u32 %s1286_s6, 4 }
  0x67   : > { %s307_s23 = scalar_lea.sflag [#allocation6], %s306_s7  ;;  %s310_s12 = scalar_lea.vmem [#allocation5], %s1296_s26 }
  0x68   : > { %1058 = dma.done.wait (%p1165_p6), %s307_s23, 512  }
  0x69   : > { %1060 = vsyncadd (%p1165_p6), %s307_s23, 4294966784  ;;  %s320_s14 = scalar_lea.vmem [#allocation7], %s1296_s26  ;;  %s327_s27 = scalar_lea.sflag [#allocation9], %s1286_s6 }
  0x6a   : > { %s330_s8 = scalar_lea.vmem [#allocation8], %s1296_s26 }
  0x6b   : > { %1062 = dma.done.wait (%p1165_p6), %s327_s27, 256  }
  0x6c   : > { %1064 = vsyncadd (%p1165_p6), %s327_s27, 4294967040  ;;  %vm394_vm0 = vcmask 261120   ;;  %v388_v0 = vld [vmem:[%s320_s14] sm:$0xff]  ;;  %v389_v2 = vld [vmem:[%s320_s14 + $0x8] sm:$0xff]  ;;  %v1093_v8 = vmov 0   ;;  %vm457_vm4 = vcmask 64512  }
  0x6d   : > { %v384_v1 = vld [vmem:[%s310_s12] sm:$0xff]  ;;  %761 = vmatpush.xpose.msk.msra.mxu0 %vm394_vm0, %v388_v0  ;;  %763 = vmatpush.xpose.msk.msra.mxu1 %vm394_vm0, %v389_v2  ;;  %v385_v4 = vld [vmem:[%s310_s12 + $0x8] sm:$0xff]  ;;  %s377_s28 = scalar_lea.vmem [#allocation11], %s1296_s26  ;;  %s778_s21 = sshll.u32 %s1147_s22, 4 }
  0x6e   : > { %v386_v3 = vmul.f32 0.17677669, %v384_v1  ;;  %v387_v5 = vmul.f32 0.17677669, %v385_v4  ;;  %v392_v6 = vld [vmem:[%s300_s13] sm:$0x1]  ;;  %s564_s1 = scalar_lea.hbm %s1388_s5, %s778_s21 }
  0x6f   : > { %vm447_vm1 = vcmp.eq.f32.partialorder %v392_v6, 0.0  ;;  %v393_v7 = vld [vmem:[%s300_s13 + $0x1] sm:$0x1]  ;;  %v390_v29 = vld [vmem:[%s330_s8] sm:$0xff]  ;;  %s565_s15 = sshll.u32 %s377_s28, 4  ;;  %s567_s20 = sshll.u32 %s564_s1, 4  ;;  %s566_s15 = int_to_ptr.vmem [resolvable:$true] %s565_s15  ;;  %s568_s20 = int_to_ptr.hbm [resolvable:$true] %s567_s20 }
  0x70   : > { %762 = vmatmul.msk.f32.vlgmr.msra.gmra.mxu0 %vm394_vm0, %v386_v3  ;;  %764 = vmatmul.msk.f32.vlgmr.msra.gmra.mxu1 %vm394_vm0, %v387_v5  ;;  %v449_v9 = vsel %vm447_vm1, 1, %v1093_v8  ;;  %vm448_vm2 = vcmp.eq.f32.partialorder %v393_v7, 0.0  ;;  %v391_v30 = vld [vmem:[%s330_s8 + $0x8] sm:$0xff]  ;;  %s536_s30 = scalar_lea.sflag [#allocation12], %s1286_s6  ;;  %s995_s17 = sshra.s32 %s568_s20, 4  ;;  %s996_s17 = int_to_ptr.hbm [resolvable:$true] %s995_s17 }
  0x71   : > { %v451_v10 = vperm.slane %v449_v9, 0  ;;  %v450_v11 = vsel %vm448_vm2, 1, %v1093_v8  ;;  %500 = vmatpush.msra.mxu2 %v390_v29  ;;  %523 = vmatpush.msra.mxu3 %v391_v30  ;;  %s997_s11 = scalar_lea.hbm %s996_s17, 16  ;;  %s1001_s22 = scalar_lea.hbm %s1388_s5, 32 }
  0x72   : > { %v452_v12 = vperm.slane %v450_v11, 0  ;;  %p998_p6 = scmp.ne.s32.totalorder %s996_s17, %s997_s11  ;;  %p1002_p3 = scmp.lt.s32.totalorder %s996_s17, %s1388_s5 }
  0x73   : > { %vm453_vm3 = vcmp.eq.s32.totalorder %v451_v10, 1  ;;  %p1003_p4 = scmp.lt.s32.totalorder %s1001_s22, %s997_s11 }
  0x74   : > { %vm454_vm5 = vcmp.eq.s32.totalorder %v452_v12, 1  ;;  %p999_p13 = pnand %p998_p6, %p1172_p11 }
  0x75   : > { %p1004_p0 = por %p1003_p4, %p1002_p3 }
  0x76   : > { %p1000_p2 = pneg %p999_p13 }
  0x78   : > { %p1005_p5 = pnand %p1004_p0, %p1000_p2 }
  0xed   : > { %v418_v13 = vpop.f32.mrf.mxu0  ;;  %v444_v16 = vpop.f32.mrf.mxu1 }
  0xee   : > { %v455_v14 = vsel %vm453_vm3, -1e+09, %v418_v13  ;;  %v456_v17 = vsel %vm454_vm5, -1e+09, %v444_v16 }
  0xef   : > { %v458_v15 = vsel %vm457_vm4, %v455_v14, -inf  ;;  %v461_v18 = vsel %vm457_vm4, %v456_v17, -inf }
  0xf0   : > { %459 = vmax.xlane.f32.xlu0 %v458_v15 }
  0xf8   : > { %462 = vmax.xlane.f32.xlu0 %v461_v18 }
 0x163   : > { %v460_v19 = vpop.xlane.xlu0 %459 }
 0x164   : > { %v464_v20 = vsub.f32 %v455_v14, %v460_v19 }
 0x166   : > { %v466_v21 = vmul.f32 1.442695, %v464_v20 }
 0x168   : > { %853 = vpow2.f32 %v466_v21 }
 0x16b   : > { %v463_v22 = vpop.xlane.xlu0 %462 }
 0x16c   : > { %v465_v23 = vsub.f32 %v456_v17, %v463_v22 }
 0x16e   : > { %v854_v24 = vpop.eup %853  ;;  %v468_v25 = vmul.f32 1.442695, %v465_v23 }
 0x16f   : > { %v470_v26 = vsel %vm457_vm4, %v854_v24, 0.0 }
 0x170   : > { %855 = vpow2.f32 %v468_v25  ;;  %471 = vadd.xlane.f32.xlu1 %v470_v26 }
 0x176   : > { %v856_v27 = vpop.eup %855 }
 0x177   : > { %v473_v28 = vsel %vm457_vm4, %v856_v27, 0.0 }
 0x178   : > { %474 = vadd.xlane.f32.xlu1 %v473_v28 }
 0x1e3   : > { %v472_v31 = vpop.xlane.xlu1 %471 }
 0x1e4   : > { %857 = vrcp.f32 %v472_v31 }
 0x1ea   : > { %v858_v32 = vpop.eup %857 }
 0x1eb   : > { %v475_v33 = vpop.xlane.xlu1 %474  ;;  %v478_v34 = vmul.f32 %v858_v32, %v854_v24 }
 0x1ec   : > { %859 = vrcp.f32 %v475_v33 }
 0x1ed   : > { %480 = vst.msk [vmem:[%s377_s28] sm:$0xff] %vm457_vm4, %v478_v34  ;;  %765 = vmatmul.msk.f32.vlgmr.msra.gmra.mxu2 %vm457_vm4, %v478_v34 }
 0x1f2   : > { %v860_v35 = vpop.eup %859 }
 0x1f3   : > { %v479_v36 = vmul.f32 %v860_v35, %v856_v27 }
 0x1f5   : > { %481 = vst.msk [vmem:[%s377_s28 + $0x8] sm:$0xff] %vm457_vm4, %v479_v36  ;;  %766 = vmatmul.msk.f32.vlgmr.msra.gmra.mxu3 %vm457_vm4, %v479_v36 }
 0x1f6   : > { %1008 = shalt.err (!%p1005_p5)
}
 0x1f7   : > { %s1094_s7 = smov 128   ;;  %s1095_s23 = smov 8  }
 0x1f8   : > { %789 = dma.vmem_to_hbm [thread:$0]  (%p1172_p11), %s566_s15, 256, %s568_s20, %s536_s30, %s1094_s7, %s1094_s7, %s1095_s23  }
 0x1f9   : > { %s370_s12 = scalar_lea.vmem [#allocation10], %s1296_s26  ;;  %s547_s8 = scalar_lea.hbm %s1387_s4, %s778_s21 }
 0x1fa   : > { %s548_s28 = sshll.u32 %s370_s12, 4  ;;  %s550_s16 = sshll.u32 %s547_s8, 4  ;;  %s549_s28 = int_to_ptr.vmem [resolvable:$true] %s548_s28  ;;  %s551_s16 = int_to_ptr.hbm [resolvable:$true] %s550_s16 }
 0x1fb   : > { %s531_s25 = scalar_lea.sflag [#allocation4], %s1286_s6  ;;  %s1023_s1 = sshra.s32 %s551_s16, 4  ;;  %s1024_s1 = int_to_ptr.hbm [resolvable:$true] %s1023_s1 }
 0x1fc   : > { %s1025_s15 = scalar_lea.hbm %s1024_s1, 16  ;;  %s1029_s30 = scalar_lea.hbm %s1387_s4, 32 }
 0x1fd   : > { %p1026_p7 = scmp.ne.s32.totalorder %s1024_s1, %s1025_s15  ;;  %p1030_p1 = scmp.lt.s32.totalorder %s1024_s1, %s1387_s4 }
 0x1fe   : > { %p1031_p6 = scmp.lt.s32.totalorder %s1029_s30, %s1025_s15 }
 0x1ff   : > { %p1027_p8 = pnand %p1026_p7, %p1172_p11 }
 0x200   : > { %p1032_p13 = por %p1031_p6, %p1030_p1 }
 0x201   : > { %p1028_p10 = pneg %p1027_p8 }
 0x203   : > { %p1033_p2 = pnand %p1032_p13, %p1028_p10 }
 0x270   : > { %v502_v37 = vpop.f32.mrf.mxu2 }
 0x271   : > { %528 = vst.msk [vmem:[%s370_s12] sm:$0xff] %vm394_vm0, %v502_v37 }
 0x278   : > { %v525_v38 = vpop.f32.mrf.mxu3 }
 0x279   : > { %529 = vst.msk [vmem:[%s370_s12 + $0x8] sm:$0xff] %vm394_vm0, %v525_v38 }
 0x27a   : > { %1036 = shalt.err (!%p1033_p2)
}
 0x27b   : > { %788 = dma.vmem_to_hbm [thread:$0]  (%p1172_p11), %s549_s28, 256, %s551_s16, %s531_s25, %s1094_s7, %s1094_s7, %s1095_s23  }
 0x27c PF: > { %s582_s10 = sand.u32 1, %s1075_s18   ;;  %p806_p3 = pnand %p742_p9, %p1176_p12 }
 0x27d   : > { %s583_s9 = scalar_lea.sflag [#allocation4], %s582_s10 }
 0x27e   : > { %p807_p4 = pneg %p806_p3 }
 0x280   : > { %1066 = dma.done.wait (%p807_p4), %s583_s9, 256  }
 0x281   : > { %1068 = vsyncadd (%p807_p4), %s583_s9, 4294967040  ;;  %s593_s22 = scalar_lea.sflag [#allocation12], %s582_s10 }
 0x282   : > { %1070 = dma.done.wait (%p807_p4), %s593_s22, 256  }
 0x283   : > { %1072 = vsyncadd (%p807_p4), %s593_s22, 4294967040  ;;  %s1414_s21 = sld [smem:[#allocation20_spill]]  ;;  %s1417_s18 = smov %s1079_s19 }
 0x284   : > { %s1415_s29 = sld [smem:[#allocation18_spill]] }
 0x285   : > { %s1416_s20 = sld [smem:[#allocation21_spill]] }
 0x289   : > { %p28_p11 = scmp.ge.s32.totalorder %s1414_s21, 4  }
 0x28a   : > { %s1418_s19 = smov %s1415_s29 }
 0x28b   :  { %30 = sbr.rel (!%p28_p11) target bundleno = 13 (0xd), region = 135 }
 0x290   :  { %599 = vsyncpa [#allocation3], 1 }
 0x291   :  { %601 = vsyncpa [#allocation3 + $0x1], 1 }
 0x292   :  { %602 = vsyncpa [#allocation6], 1 }
 0x293   :  { %604 = vsyncpa [#allocation6 + $0x1], 1 }
 0x294   :  { %605 = vsyncpa [#allocation9], 1 }
 0x295   :  { %607 = vsyncpa [#allocation9 + $0x1], 1 }
 0x296   :  { %608 = vsyncpa [#allocation4], 1 }
 0x297   :  { %610 = vsyncpa [#allocation4 + $0x1], 1 }
 0x298   :  { %611 = vsyncpa [#allocation12], 1 }
 0x299   :  { %613 = vsyncpa [#allocation12 + $0x1], 1 }

</bundles_post_ra>
